<compile_context>
chip_gen: v7x
topology: tpu7x:2x2x1
jax: 0.10.0
libtpu: 0.0.40
codegen_flags: <defaults>
</compile_context>

<pallas_src>
import functools

import jax
import jax.numpy as jnp
from jax.experimental import pallas as pl
from jax.experimental.pallas import tpu as pltpu


def _round_up(x, m):
    return (x + m - 1) // m * m


# Conservative per-kernel VMEM footprint target: fits the *default* scoped
# VMEM of every generation (16 MiB v5e, 32 MiB v6e/v7x) with headroom, even
# assuming the pipeline double-buffers every operand.
_VMEM_TILE_BUDGET_BYTES = 12 * 1024 * 1024


def _pca_matmul_kernel(x_ref, w_ref, o_ref, *, compute_dtype):
    """out = x @ w for one batch tile, full K and full (padded) L in one pass.

    x_ref: (tb, K)   VMEM tile of the flattened blur kernels
    w_ref: (K, Lp)   lane-padded PCA weight (same block every grid step ->
                     DMA'd once, stays resident)
    o_ref: (tb, Lp)  lane-dense output tile
    """
    x = x_ref[...]
    w = w_ref[...]
    if compute_dtype is not None and x.dtype != compute_dtype:
        # In-kernel cast: cheap VPU work in a slot with plenty of slack, and it
        # keeps x at a single HBM read (no wrapper-side astype pass).
        x = x.astype(compute_dtype)
        w = w.astype(compute_dtype)
    o_ref[...] = jnp.dot(
        x, w, preferred_element_type=jnp.float32
    ).astype(o_ref.dtype)


def prepare_pca_weight(weight, dtype=None):
    """One-time (module-init) layout prep of the constant PCA buffer.

    Pads L up to a multiple of 128 so the weight tile and the kernel output
    are lane-dense (unmasked vst), and optionally casts ONCE (never per call).
    """
    _, L = weight.shape
    Lp = _round_up(L, 128)
    if dtype is not None:
        weight = weight.astype(dtype)
    if Lp != L:
        weight = jnp.pad(weight, ((0, 0), (0, Lp - L)))
    return weight


def _choose_tiling(B, K, Lp, x_itemsize, w_itemsize, max_rows_per_tile=None):
    """Pick (tb, n_tiles) so one tile fits the conservative VMEM budget.

    Default: the whole batch in one grid step (no per-step pipeline overhead).
    Only for very large B do we split into an even grid of >=2 steps (which
    also lets the 'parallel' batch axis shard across v7x's 2 TensorCores).
    """
    row_align = 8
    Bp8 = _round_up(B, row_align)
    # Resident weight (counted double-buffered, to be safe) + per-row bytes
    # for the double-buffered x tile and output tile.
    weight_bytes = 2 * K * Lp * w_itemsize
    row_bytes = 2 * (K + Lp) * x_itemsize
    budget = _VMEM_TILE_BUDGET_BYTES - weight_bytes
    max_tb = max(row_align, (budget // row_bytes) // row_align * row_align)
    if max_rows_per_tile is not None:
        max_tb = min(max_tb, _round_up(max_rows_per_tile, row_align))
    if Bp8 <= max_tb:
        return Bp8, 1                      # single grid step, <=7 pad rows
    n_tiles = -(-Bp8 // max_tb)            # even tiles, <8*n_tiles pad rows
    Bp = _round_up(B, row_align * n_tiles)
    return Bp // n_tiles, n_tiles


@functools.partial(
    jax.jit,
    static_argnames=("out_features", "compute_dtype", "max_rows_per_tile"),
)
def pca_encoder_forward(
    batch_kernel,
    weight_padded,
    *,
    out_features,
    compute_dtype=None,
    max_rows_per_tile=None,
):
    """Pallas implementation of PCAEncoder.forward.

    batch_kernel:  (B, H, W)
    weight_padded: (H*W, Lp), Lp a multiple of 128 (from prepare_pca_weight)
    out_features:  original L (output sliced back to this width)
    compute_dtype: None -> compute in the input dtype (bit-compat default);
                   jnp.bfloat16 -> cast in-kernel, accumulate in f32.
    returns:       (B, out_features) in batch_kernel.dtype
    """
    B, H, W = batch_kernel.shape
    K, Lp = weight_padded.shape
    assert K == H * W, "weight first dim must equal H*W"
    assert Lp % 128 == 0, "call prepare_pca_weight() once at init"

    # Flatten spatial dims (matches torch .view((B, 1, H*W))); no data movement.
    x = batch_kernel.reshape(B, K)

    tb, n_tiles = _choose_tiling(
        B, K, Lp, x.dtype.itemsize, weight_padded.dtype.itemsize,
        max_rows_per_tile,
    )
    Bp = tb * n_tiles
    if Bp != B:
        # Tiny zero pad (sublane alignment only); mathematically inert.
        x = jnp.pad(x, ((0, Bp - B), (0, 0)))

    cost = pl.CostEstimate(
        flops=2 * Bp * K * Lp,
        transcendentals=0,
        bytes_accessed=(
            Bp * K * x.dtype.itemsize
            + K * Lp * weight_padded.dtype.itemsize
            + Bp * Lp * x.dtype.itemsize
        ),
    )

    out = pl.pallas_call(
        functools.partial(_pca_matmul_kernel, compute_dtype=compute_dtype),
        out_shape=jax.ShapeDtypeStruct((Bp, Lp), batch_kernel.dtype),
        grid_spec=pltpu.PrefetchScalarGridSpec(
            num_scalar_prefetch=0,
            grid=(n_tiles,),
            in_specs=[
                # x: one batch tile per grid step, full K (no reduction grid).
                pl.BlockSpec((tb, K), lambda i: (i, 0)),
                # weight: same block every step -> fetched once, stays resident.
                pl.BlockSpec((K, Lp), lambda i: (0, 0)),
            ],
            out_specs=pl.BlockSpec((tb, Lp), lambda i: (i, 0)),
        ),
        compiler_params=pltpu.CompilerParams(
            # Batch axis is independent -> megacore/2-TC sharding on v7x
            # whenever n_tiles >= 2; a no-op for the single-step case.
            dimension_semantics=("parallel",),
            # Explicit, generation-portable scoped-VMEM limit (tile sizing
            # above already fits every generation's default with margin).
            vmem_limit_bytes=32 * 1024 * 1024,
        ),
        cost_estimate=cost,
    )(x, weight_padded)

    # Slice away sublane/lane padding back to the module's (B, L) output.
    return out[:B, :out_features]


if __name__ == "__main__":
    # Small, deterministic shapes consistent with the module:
    # blur-kernel batch (B, H, W) and PCA weight buffer (H*W, L).
    B, H, W, L = 2, 16, 16, 32
    key = jax.random.PRNGKey(0)
    k_x, k_w, k_x2 = jax.random.split(key, 3)

    batch_kernel = jax.random.normal(k_x, (B, H, W), dtype=jnp.float32)
    # Deterministic synthetic PCA projection matrix (module buffer `weight`).
    weight = jax.random.normal(k_w, (H * W, L), dtype=jnp.float32) / jnp.sqrt(H * W)

    # One-time layout prep of the constant buffer (lane-dense L).
    weight_padded = prepare_pca_weight(weight)

    # Default path: whole batch in a single grid step.
    out = pca_encoder_forward(batch_kernel, weight_padded, out_features=L)
    out = jax.block_until_ready(out)
    ref = batch_kernel.reshape(B, H * W) @ weight
    assert out.shape == (B, L)
    assert jnp.allclose(out, ref, atol=1e-5, rtol=1e-5)

    # Tiled path (forced small tiles) to exercise the multi-step grid that a
    # very large batch would take; still tiny shapes so the test stays fast.
    B2 = 20
    batch_kernel2 = jax.random.normal(k_x2, (B2, H, W), dtype=jnp.float32)
    out2 = pca_encoder_forward(
        batch_kernel2, weight_padded, out_features=L, max_rows_per_tile=8
    )
    out2 = jax.block_until_ready(out2)
    ref2 = batch_kernel2.reshape(B2, H * W) @ weight
    assert out2.shape == (B2, L)
    assert jnp.allclose(out2, ref2, atol=1e-5, rtol=1e-5)

    print("KERNEL_OK")
</pallas_src>

<mosaic_0001>
module attributes {stable_mosaic.version = 11 : i64} {
  func.func @_pca_matmul_kernel(%arg0: i32, %arg1: memref<8x256xf32, #tpu.memory_space<vmem>>, %arg2: memref<256x128xf32, #tpu.memory_space<vmem>>, %arg3: memref<8x128xf32, #tpu.memory_space<vmem>>) attributes {dimension_semantics = [#tpu.dimension_semantics<parallel>], iteration_bounds = array<i64: 1>, scalar_prefetch = 0 : i64, scratch_operands = 0 : i64, tpu.core_type = #tpu.core_type<tc>, window_params = [{transform_indices = @transform_0, window_bounds = array<i64: 8, 256>}, {pipeline_mode = #tpu.pipeline_mode<synchronous>, transform_indices = @transform_1, window_bounds = array<i64: 256, 128>}, {transform_indices = @transform_2, window_bounds = array<i64: 8, 128>}]} {
    %c0 = arith.constant 0 : index
    %c0_0 = arith.constant 0 : index
    %0 = vector.load %arg1[%c0, %c0_0] : memref<8x256xf32, #tpu.memory_space<vmem>>, vector<8x256xf32>
    %c0_1 = arith.constant 0 : index
    %c0_2 = arith.constant 0 : index
    %1 = vector.load %arg2[%c0_1, %c0_2] : memref<256x128xf32, #tpu.memory_space<vmem>>, vector<256x128xf32>
    %cst = arith.constant dense<0.000000e+00> : vector<8x128xf32>
    %2 = tpu.matmul %0, %1, %cst {dimension_numbers = #tpu.dot_dimension_numbers<[1], [0], [0], [1], [0, 0, 1, 1], [], []>} : vector<8x256xf32>, vector<256x128xf32>, vector<8x128xf32> -> vector<8x128xf32>
    %c0_3 = arith.constant 0 : index
    %c0_4 = arith.constant 0 : index
    %3 = vector.load %arg3[%c0_3, %c0_4] : memref<8x128xf32, #tpu.memory_space<vmem>>, vector<8x128xf32>
    tpu.vector_store %arg3[%c0_3, %c0_4], %2 {strides = array<i32>} : memref<8x128xf32, #tpu.memory_space<vmem>>, vector<8x128xf32>,
    return
  }
  func.func @transform_0(%arg0: i32) -> (i32, i32) {
    %c0_i32 = arith.constant 0 : i32
    %c0_i32_0 = arith.constant 0 : i32
    return %arg0, %c0_i32 : i32, i32
  }
  func.func @transform_1(%arg0: i32) -> (i32, i32) {
    %c0_i32 = arith.constant 0 : i32
    %c0_i32_0 = arith.constant 0 : i32
    %c0_i32_1 = arith.constant 0 : i32
    return %c0_i32, %c0_i32_0 : i32, i32
  }
  func.func @transform_2(%arg0: i32) -> (i32, i32) {
    %c0_i32 = arith.constant 0 : i32
    %c0_i32_0 = arith.constant 0 : i32
    return %arg0, %c0_i32 : i32, i32
  }
}

</mosaic_0001>

<bundles_post_ra>
// kernel: pca_encoder_forward.1
= control target key start
LH: loop header
LB: loop body
LE: loop exit
PB: predicated region body
PF: predicated region fallthrough
CT: control target
= control target key end

     0   :  { %7 = vsyncpa [#allocation3], 0  ;;  %s229_s9 = smov [#allocation2]   ;;  %s268_s0 = inlined_call_operand.vmem [shape: f32[8,256], index: 0, kind: input, shape index: {}]   ;;  %s269_s1 = inlined_call_operand.hbm [shape: f32[256,128], index: 1, kind: input, shape index: {}]   ;;  %s270_s2 = inlined_call_operand.vmem [shape: f32[8,128], index: 2, kind: output, shape index: {}]  }
   0x1   :  { %s15_s10 = sshll.u32 %s229_s9, 4  ;;  %s205_s13 = scalar_lea.hbm %s269_s1, 4096  ;;  %s16_s10 = int_to_ptr.vmem [resolvable:$true] %s15_s10 }
   0x2   :  { %p206_p0 = scmp.ne.s32.totalorder %s269_s1, %s205_s13  ;;  %p209_p1 = scmp.lt.u32.totalorder %s205_s13, %s269_s1 }
   0x4   :  { %p211_p2 = pnand %p209_p1, %p206_p0 }
   0x6   :  { %214 = shalt.err (!%p211_p2)
}
   0x7   :  { %s215_s18 = scalar_lea.vmem %s16_s10, 4096  ;;  %p220_p4 = scmp.lt.s32.totalorder %s16_s10, %s16_s10 }
   0x8   :  { %p216_p3 = scmp.ne.s32.totalorder %s16_s10, %s215_s18  ;;  %p221_p5 = scmp.lt.s32.totalorder %s215_s18, %s215_s18 }
   0xa   :  { %p222_p6 = por %p221_p5, %p220_p4 }
   0xc   :  { %p223_p7 = pnand %p222_p6, %p216_p3 }
   0xe   :  { %226 = shalt.err (!%p223_p7)
}
   0xf   :  { %s230_s19 = smov 128   ;;  %s231_s20 = smov 8  }
  0x10   :  { %21 = dma.hbm_to_vmem [thread:$0]  %s269_s1, 4096, %s16_s10, [#allocation3], %s230_s19, %s230_s19, %s231_s20  }
  0x11   :  { %227 = dma.done.wait [#allocation3], 4096  }
  0x12   :  { %228 = vsyncadd [#allocation3], 4294963200  ;;  %v43_v0 = vld [vmem:[#allocation2 + $0x80] sm:$0xff]  ;;  %v44_v1 = vld [vmem:[#allocation2 + $0x88] sm:$0xff] }
  0x13   :  { %v27_v2 = vld [vmem:[#allocation2] sm:$0xff]  ;;  %v170_v3 = vpack.c.bf16 %v44_v1, %v43_v0  ;;  %v28_v4 = vld [vmem:[#allocation2 + $0x8] sm:$0xff]  ;;  %v45_v5 = vld [vmem:[#allocation2 + $0x90] sm:$0xff] }
  0x14   :  { %v46_v6 = vld [vmem:[#allocation2 + $0x98] sm:$0xff]  ;;  %v172_v7 = vpack.c.bf16 %v28_v4, %v27_v2  ;;  %v29_v9 = vld [vmem:[#allocation2 + $0x10] sm:$0xff]  ;;  %v47_v11 = vld [vmem:[#allocation2 + $0xa0] sm:$0xff] }
  0x15   :  { %v174_v8 = vpack.c.bf16 %v46_v6, %v45_v5  ;;  %v30_v10 = vld [vmem:[#allocation2 + $0x18] sm:$0xff]  ;;  %171 = vmatprep.subr.bf16.mxu0 %v170_v3  ;;  %v48_v12 = vld [vmem:[#allocation2 + $0xa8] sm:$0xff]  ;;  %v31_v15 = vld [vmem:[#allocation2 + $0x20] sm:$0xff] }
  0x16   :  { %173 = vmatpush3.bf16.msra.mxu0 %v172_v7  ;;  %v176_v13 = vpack.c.bf16 %v30_v10, %v29_v9  ;;  %v178_v14 = vpack.c.bf16 %v48_v12, %v47_v11  ;;  %v32_v16 = vld [vmem:[#allocation2 + $0x28] sm:$0xff]  ;;  %v49_v17 = vld [vmem:[#allocation2 + $0xb0] sm:$0xff]  ;;  %v50_v18 = vld [vmem:[#allocation2 + $0xb8] sm:$0xff] }
  0x17   :  { %175 = vmatprep.subr.bf16.mxu0 %v174_v8  ;;  %v180_v19 = vpack.c.bf16 %v32_v16, %v31_v15  ;;  %v182_v20 = vpack.c.bf16 %v50_v18, %v49_v17  ;;  %v33_v21 = vld [vmem:[#allocation2 + $0x30] sm:$0xff]  ;;  %v34_v22 = vld [vmem:[#allocation2 + $0x38] sm:$0xff]  ;;  %v51_v23 = vld [vmem:[#allocation2 + $0xc0] sm:$0xff] }
  0x18   :  { %v52_v24 = vld [vmem:[#allocation2 + $0xc8] sm:$0xff]  ;;  %v184_v26 = vpack.c.bf16 %v34_v22, %v33_v21  ;;  %v35_v28 = vld [vmem:[#allocation2 + $0x40] sm:$0xff]  ;;  %v53_v30 = vld [vmem:[#allocation2 + $0xd0] sm:$0xff] }
  0x19   :  { %v26_v25 = vld [vmem:[%s268_s0 + $0x8] sm:$0xff]  ;;  %v186_v27 = vpack.c.bf16 %v52_v24, %v51_v23  ;;  %v54_v31 = vld [vmem:[#allocation2 + $0xd8] sm:$0xff]  ;;  %v37_v34 = vld [vmem:[#allocation2 + $0x50] sm:$0xff] }
  0x1a   :  { %177 = vmatpush3.bf16.msra.mxu0 %v176_v13  ;;  %123 = vmatprep.mubr.f32.mxu0 %v26_v25  ;;  %v36_v29 = vld [vmem:[#allocation2 + $0x48] sm:$0xff]  ;;  %v190_v33 = vpack.c.bf16 %v54_v31, %v53_v30  ;;  %v38_v35 = vld [vmem:[#allocation2 + $0x58] sm:$0xff]  ;;  %v55_v36 = vld [vmem:[#allocation2 + $0xe0] sm:$0xff] }
  0x1b   :  { %179 = vmatprep.subr.bf16.mxu0 %v178_v14  ;;  %v188_v32 = vpack.c.bf16 %v36_v29, %v35_v28  ;;  %v56_v37 = vld [vmem:[#allocation2 + $0xe8] sm:$0xff]  ;;  %v192_v38 = vpack.c.bf16 %v38_v35, %v37_v34  ;;  %v39_v40 = vld [vmem:[#allocation2 + $0x60] sm:$0xff]  ;;  %v57_v42 = vld [vmem:[#allocation2 + $0xf0] sm:$0xff] }
  0x1c   :  { %v194_v39 = vpack.c.bf16 %v56_v37, %v55_v36  ;;  %v40_v41 = vld [vmem:[#allocation2 + $0x68] sm:$0xff]  ;;  %v58_v43 = vld [vmem:[#allocation2 + $0xf8] sm:$0xff]  ;;  %v41_v46 = vld [vmem:[#allocation2 + $0x70] sm:$0xff] }
  0x1d   :  { %v196_v44 = vpack.c.bf16 %v40_v41, %v39_v40  ;;  %v198_v45 = vpack.c.bf16 %v58_v43, %v57_v42  ;;  %v42_v47 = vld [vmem:[#allocation2 + $0x78] sm:$0xff]  ;;  %v25_v49 = vld [vmem:[%s268_s0] sm:$0xff] }
  0x1e   :  { %181 = vmatpush3.bf16.msra.mxu0 %v180_v19  ;;  %v200_v48 = vpack.c.bf16 %v42_v47, %v41_v46 }
  0x1f   :  { %183 = vmatprep.subr.bf16.mxu0 %v182_v20 }
  0x22   :  { %185 = vmatpush3.bf16.msra.mxu0 %v184_v26 }
  0x23   :  { %187 = vmatprep.subr.bf16.mxu0 %v186_v27 }
  0x26   :  { %189 = vmatpush3.bf16.msra.mxu0 %v188_v32 }
  0x27   :  { %191 = vmatprep.subr.bf16.mxu0 %v190_v33 }
  0x2a   :  { %193 = vmatpush3.bf16.msra.mxu0 %v192_v38 }
  0x2b   :  { %195 = vmatprep.subr.bf16.mxu0 %v194_v39 }
  0x2e   :  { %197 = vmatpush3.bf16.msra.mxu0 %v196_v44 }
  0x2f   :  { %199 = vmatprep.subr.bf16.mxu0 %v198_v45 }
  0x32   :  { %201 = vmatpush3.bf16.msra.mxu0 %v200_v48 }
  0x35   :  { %124 = vmatmul.mubr.f32.vlgmr.msra.gmra.mrb[0].mxu0 %v25_v49 }
 0x108   :  { %v167_v50 = vpop.f32.mrb[0].mxu0 }
 0x109   :  { %v168_v51 = vpop.f32.mrb[1].mxu0 }
 0x10a   :  { %v169_v52 = vadd.f32 %v168_v51, %v167_v50 }
 0x10c   :  { %129 = vst [vmem:[%s270_s2] sm:$0xff] %v169_v52 }
 0x10d   :  { %134 = vsyncpa [#allocation3], 1 }

</bundles_post_ra>
